<compile_context>
chip_gen: v5e
topology: v5e:2x2
jax: 0.10.0
libtpu: 0.0.40
codegen_flags: <defaults>
</compile_context>

<pallas_src>
import jax
import jax.numpy as jnp
from jax.experimental import pallas as pl
from jax.experimental.pallas import tpu as pltpu


def gln_kernel(x_ref, adjv_ref, pool_ref, cnt_ref,
               emb_w_ref, root_w_ref, conv_w_ref, mlp_w1_ref, small_ref,
               out_ref):
    f32 = jnp.float32
    bf16 = jnp.bfloat16

    n_layers, nhid = root_w_ref.shape[0], root_w_ref.shape[2]
    N = x_ref.shape[0]
    L = conv_w_ref.shape[0] // n_layers

    # Stacked adjacencies [adj_0; ...; adj_{L-1}] -> [L*N, N] bf16 (exact counts),
    # reused by every layer.
    adjv = adjv_ref[...]

    # embedding: Linear(in_feat, nhid) with bias (row `n_layers` of the slab).
    h = (jnp.dot(x_ref[...], emb_w_ref[...], preferred_element_type=f32)
         + small_ref[n_layers:n_layers + 1, :])                       # [N, nhid] f32

    # RGNN layers, statically unrolled. Aggregate-first: one [L*N,N]@[N,nhid]
    # matmul, then L+1 small [N,nhid]@[nhid,nhid] matmuls on sublane-aligned
    # row slices (no lane->sublane relayout).
    for layer in range(n_layers):
        hb = h.astype(bf16)
        m = jnp.dot(adjv, hb, preferred_element_type=f32)             # [L*N, nhid]
        out = (jnp.dot(hb, root_w_ref[layer], preferred_element_type=f32)
               + small_ref[layer:layer + 1, :])                       # [N, nhid]
        for l in range(L):
            out = out + jnp.dot(m[l * N:(l + 1) * N].astype(bf16),
                                conv_w_ref[layer * L + l],
                                preferred_element_type=f32)
        h = jnp.maximum(out, 0.0) if layer < n_layers - 1 else out

    # global mean pool: exact 0/1 bf16 pool matrix, 1/count applied in f32 after.
    pooled = (jnp.dot(pool_ref[...], h.astype(bf16), preferred_element_type=f32)
              / cnt_ref[...])                                         # [G, nhid] f32

    # MLP head: Linear -> ReLU -> Linear(nhid, 1) (last layer as a lane reduction).
    z = jnp.maximum(
        jnp.dot(pooled.astype(bf16), mlp_w1_ref[...], preferred_element_type=f32)
        + small_ref[n_layers + 1:n_layers + 2, :], 0.0)               # [G, nhid]
    w2_row = small_ref[n_layers + 2:n_layers + 3, :]                  # [1, nhid]
    b2 = small_ref[n_layers + 3:n_layers + 4, 0:1]                    # [1, 1]
    out_ref[...] = jnp.sum(z * w2_row, axis=-1, keepdims=True) + b2   # [G, 1]


def pack_gln_params(params):
    """One-time packing of weights (per weight update), hoisted out of the call path."""
    f32, bf16 = jnp.float32, jnp.bfloat16
    nlayers, nhid = params['root_w'].shape[0], params['root_w'].shape[1]
    L = params['conv_w'].shape[1]

    # Small params packed into one (nlayers+4, nhid) f32 slab (one tiny VMEM tile):
    #   rows 0..nlayers-1: root biases; nlayers: emb bias; nlayers+1: mlp bias 1;
    #   nlayers+2: mlp_w2 as a row; nlayers+3, col 0: mlp_b2 scalar.
    small = jnp.zeros((nlayers + 4, nhid), f32)
    small = small.at[:nlayers].set(params['root_b'])
    small = small.at[nlayers].set(params['emb_b'][0])
    small = small.at[nlayers + 1].set(params['mlp_b1'][0])
    small = small.at[nlayers + 2].set(params['mlp_w2'][:, 0])
    small = small.at[nlayers + 3, 0].set(params['mlp_b2'][0, 0])

    return dict(
        emb_w=params['emb_w'].astype(bf16),
        root_w=params['root_w'].astype(bf16),                          # [nlayers, nhid, nhid]
        conv_w=params['conv_w'].reshape(nlayers * L, nhid, nhid).astype(bf16),
        mlp_w1=params['mlp_w1'].astype(bf16),
        small=small,
        nlayers=nlayers, L=L, nhid=nhid,
    )


def gln_forward(x, adj, pool_mat, cnt, packed):
    """x: [B,N,in_feat] f32, adj: [B,L,N,N] f32 counts, pool_mat: [B,G,N] 0/1,
    cnt: [B,G,1] f32.  Returns [B,G] f32 (one scalar per graph per batch)."""
    f32, bf16 = jnp.float32, jnp.bfloat16
    B, N, in_feat = x.shape
    L = adj.shape[1]
    G = pool_mat.shape[1]
    nlayers, nhid = packed['nlayers'], packed['nhid']

    # Stacked adjacencies per batch: [adj_0; ...; adj_{L-1}] -> [B, L*N, N] bf16
    # (counts are small integers, exact in bf16). No identity block.
    adjv = adj.reshape(B, L * N, N).astype(bf16)
    pool_bf = pool_mat.astype(bf16)            # exact 0/1
    cnt_f32 = cnt.astype(f32)

    sq = pl.Squeezed()
    out = pl.pallas_call(
        gln_kernel,
        out_shape=jax.ShapeDtypeStruct((B, G, 1), jnp.float32),
        grid_spec=pltpu.PrefetchScalarGridSpec(
            num_scalar_prefetch=0,
            grid=(B,),
            in_specs=[
                # per-batch inputs
                pl.BlockSpec((sq, N, in_feat), lambda b: (b, 0, 0)),
                pl.BlockSpec((sq, L * N, N), lambda b: (b, 0, 0)),
                pl.BlockSpec((sq, G, N), lambda b: (b, 0, 0)),
                pl.BlockSpec((sq, G, 1), lambda b: (b, 0, 0)),
                # shared weights (constant block index -> stay resident across grid)
                pl.BlockSpec((in_feat, nhid), lambda b: (0, 0)),
                pl.BlockSpec((nlayers, nhid, nhid), lambda b: (0, 0, 0)),
                pl.BlockSpec((nlayers * L, nhid, nhid), lambda b: (0, 0, 0)),
                pl.BlockSpec((nhid, nhid), lambda b: (0, 0)),
                pl.BlockSpec((nlayers + 4, nhid), lambda b: (0, 0)),
            ],
            out_specs=pl.BlockSpec((sq, G, 1), lambda b: (b, 0, 0)),
        ),
        compiler_params=pltpu.CompilerParams(
            dimension_semantics=("parallel",)),
    )(x.astype(bf16), adjv, pool_bf, cnt_f32,
      packed['emb_w'], packed['root_w'], packed['conv_w'],
      packed['mlp_w1'], packed['small'])
    return out[:, :, 0]   # h.squeeze(1) per batch


def gln_reference(x, adj, pool_mat, cnt, params):
    """Pure-JAX f32 reference of the original (unfused) forward, single batch."""
    h = x @ params['emb_w'] + params['emb_b']
    nlayers = params['root_w'].shape[0]
    L = params['conv_w'].shape[1]
    for layer in range(nlayers):
        out = h @ params['root_w'][layer] + params['root_b'][layer][None, :]
        for l in range(L):
            out = out + adj[l] @ (h @ params['conv_w'][layer, l])
        h = jnp.maximum(out, 0.0) if layer < nlayers - 1 else out
    pooled = (pool_mat @ h) / cnt
    z = jnp.maximum(pooled @ params['mlp_w1'] + params['mlp_b1'], 0.0)
    return (z @ params['mlp_w2'] + params['mlp_b2'])[:, 0]


if __name__ == "__main__":
    key = jax.random.PRNGKey(0)
    B = 2                                   # independent graph batches (grid axis)
    N, in_feat, nhid = 16, 8, 32            # nodes per batch, in features, hidden
    n_edge_labels, nlayers, G, E = 3, 4, 2, 24

    keys = jax.random.split(key, 12)
    x = jax.random.normal(keys[0], (B, N, in_feat), jnp.float32)

    # edge_index per edge label -> dense adjacency adj[b, l, dst, src] (aggr='sum')
    src = jax.random.randint(keys[1], (B, n_edge_labels, E), 0, N)
    dst = jax.random.randint(keys[2], (B, n_edge_labels, E), 0, N)
    adj = jnp.zeros((B, n_edge_labels, N, N), jnp.float32)
    for b in range(B):
        for l in range(n_edge_labels):
            adj = adj.at[b, l, dst[b, l], src[b, l]].add(1.0)

    # batch assignment inside each graph batch: first half -> graph 0, rest -> graph 1
    assign = jnp.concatenate([jnp.zeros(N // 2, jnp.int32),
                              jnp.ones(N - N // 2, jnp.int32)])
    pool_one = (assign[None, :] == jnp.arange(G)[:, None]).astype(jnp.float32)  # [G, N]
    pool_mat = jnp.broadcast_to(pool_one, (B, G, N))
    cnt = pool_mat.sum(axis=2, keepdims=True)                                    # [B, G, 1]

    def init(k, shape, scale=0.1):
        return scale * jax.random.normal(k, shape, jnp.float32)

    params = dict(
        emb_w=init(keys[3], (in_feat, nhid)),
        emb_b=init(keys[4], (1, nhid)),
        root_w=init(keys[5], (nlayers, nhid, nhid)),
        root_b=init(keys[6], (nlayers, nhid)),
        conv_w=init(keys[7], (nlayers, n_edge_labels, nhid, nhid)),
        mlp_w1=init(keys[8], (nhid, nhid)),
        mlp_b1=init(keys[9], (1, nhid)),
        mlp_w2=init(keys[10], (nhid, 1)),
        mlp_b2=init(keys[11], (1, 1)),
    )

    packed = pack_gln_params(params)        # once per weight update, not per call
    out = gln_forward(x, adj, pool_mat, cnt, packed)
    jax.block_until_ready(out)
    assert out.shape == (B, G)

    ref = jnp.stack([gln_reference(x[b], adj[b], pool_mat[b], cnt[b], params)
                     for b in range(B)])
    # bf16 MXU operands (f32 accumulation) -> expect ~1e-2 relative drift.
    assert jnp.max(jnp.abs(out - ref)) < 5e-2, (out, ref)
    print("KERNEL_OK")
</pallas_src>

<mosaic_0001>
module attributes {stable_mosaic.version = 11 : i64} {
  func.func @gln_kernel(%arg0: i32, %arg1: memref<1x16x8xbf16, #tpu.memory_space<vmem>>, %arg2: memref<1x48x16xbf16, #tpu.memory_space<vmem>>, %arg3: memref<1x2x16xbf16, #tpu.memory_space<vmem>>, %arg4: memref<1x2x1xf32, #tpu.memory_space<vmem>>, %arg5: memref<8x32xbf16, #tpu.memory_space<vmem>>, %arg6: memref<4x32x32xbf16, #tpu.memory_space<vmem>>, %arg7: memref<12x32x32xbf16, #tpu.memory_space<vmem>>, %arg8: memref<32x32xbf16, #tpu.memory_space<vmem>>, %arg9: memref<8x32xf32, #tpu.memory_space<vmem>>, %arg10: memref<1x2x1xf32, #tpu.memory_space<vmem>>) attributes {dimension_semantics = [#tpu.dimension_semantics<parallel>], iteration_bounds = array<i64: 2>, scalar_prefetch = 0 : i64, scratch_operands = 0 : i64, tpu.core_type = #tpu.core_type<tc>, window_params = [{transform_indices = @transform_0, window_bounds = array<i64: 1, 16, 8>}, {transform_indices = @transform_1, window_bounds = array<i64: 1, 48, 16>}, {transform_indices = @transform_2, window_bounds = array<i64: 1, 2, 16>}, {transform_indices = @transform_3, window_bounds = array<i64: 1, 2, 1>}, {pipeline_mode = #tpu.pipeline_mode<synchronous>, transform_indices = @transform_4, window_bounds = array<i64: 8, 32>}, {pipeline_mode = #tpu.pipeline_mode<synchronous>, transform_indices = @transform_5, window_bounds = array<i64: 4, 32, 32>}, {pipeline_mode = #tpu.pipeline_mode<synchronous>, transform_indices = @transform_6, window_bounds = array<i64: 12, 32, 32>}, {pipeline_mode = #tpu.pipeline_mode<synchronous>, transform_indices = @transform_7, window_bounds = array<i64: 32, 32>}, {pipeline_mode = #tpu.pipeline_mode<synchronous>, transform_indices = @transform_8, window_bounds = array<i64: 8, 32>}, {transform_indices = @transform_9, window_bounds = array<i64: 1, 2, 1>}]} {
    %c0 = arith.constant 0 : index
    %c0_0 = arith.constant 0 : index
    %c0_1 = arith.constant 0 : index
    %0 = vector.load %arg2[%c0, %c0_0, %c0_1] : memref<1x48x16xbf16, #tpu.memory_space<vmem>>, vector<1x48x16xbf16>
    %1 = vector.shape_cast %0 : vector<1x48x16xbf16> to vector<48x16xbf16>
    %c0_2 = arith.constant 0 : index
    %c0_3 = arith.constant 0 : index
    %c0_4 = arith.constant 0 : index
    %2 = vector.load %arg1[%c0_2, %c0_3, %c0_4] : memref<1x16x8xbf16, #tpu.memory_space<vmem>>, vector<1x16x8xbf16>
    %3 = vector.shape_cast %2 : vector<1x16x8xbf16> to vector<16x8xbf16>
    %c0_5 = arith.constant 0 : index
    %c0_6 = arith.constant 0 : index
    %4 = vector.load %arg5[%c0_5, %c0_6] : memref<8x32xbf16, #tpu.memory_space<vmem>>, vector<8x32xbf16>
    %cst = arith.constant dense<0.000000e+00> : vector<16x32xf32>
    %5 = tpu.matmul %3, %4, %cst {dimension_numbers = #tpu.dot_dimension_numbers<[1], [0], [0], [1], [0, 0, 1, 1], [], []>} : vector<16x8xbf16>, vector<8x32xbf16>, vector<16x32xf32> -> vector<16x32xf32>
    %c4 = arith.constant 4 : index
    %c0_7 = arith.constant 0 : index
    %6 = vector.load %arg9[%c4, %c0_7] : memref<8x32xf32, #tpu.memory_space<vmem>>, vector<1x32xf32>
    %7 = vector.broadcast %6 : vector<1x32xf32> to vector<16x32xf32>
    %8 = arith.addf %5, %7 : vector<16x32xf32>
    %9 = arith.truncf %8 : vector<16x32xf32> to vector<16x32xbf16>
    %cst_8 = arith.constant dense<0.000000e+00> : vector<48x32xf32>
    %10 = tpu.matmul %1, %9, %cst_8 {dimension_numbers = #tpu.dot_dimension_numbers<[1], [0], [0], [1], [0, 0, 1, 1], [], []>} : vector<48x16xbf16>, vector<16x32xbf16>, vector<48x32xf32> -> vector<48x32xf32>
    %c0_9 = arith.constant 0 : index
    %c0_10 = arith.constant 0 : index
    %c0_11 = arith.constant 0 : index
    %11 = vector.load %arg6[%c0_9, %c0_10, %c0_11] : memref<4x32x32xbf16, #tpu.memory_space<vmem>>, vector<1x32x32xbf16>
    %12 = vector.shape_cast %11 : vector<1x32x32xbf16> to vector<32x32xbf16>
    %cst_12 = arith.constant dense<0.000000e+00> : vector<16x32xf32>
    %13 = tpu.matmul %9, %12, %cst_12 {dimension_numbers = #tpu.dot_dimension_numbers<[1], [0], [0], [1], [0, 0, 1, 1], [], []>} : vector<16x32xbf16>, vector<32x32xbf16>, vector<16x32xf32> -> vector<16x32xf32>
    %c0_13 = arith.constant 0 : index
    %c0_14 = arith.constant 0 : index
    %14 = vector.load %arg9[%c0_13, %c0_14] : memref<8x32xf32, #tpu.memory_space<vmem>>, vector<1x32xf32>
    %15 = vector.broadcast %14 : vector<1x32xf32> to vector<16x32xf32>
    %16 = arith.addf %13, %15 : vector<16x32xf32>
    %17 = vector.extract_strided_slice %10 {offsets = [0, 0], sizes = [16, 32], strides = [1, 1]} : vector<48x32xf32> to vector<16x32xf32>
    %18 = arith.truncf %17 : vector<16x32xf32> to vector<16x32xbf16>
    %c0_15 = arith.constant 0 : index
    %c0_16 = arith.constant 0 : index
    %c0_17 = arith.constant 0 : index
    %19 = vector.load %arg7[%c0_15, %c0_16, %c0_17] : memref<12x32x32xbf16, #tpu.memory_space<vmem>>, vector<1x32x32xbf16>
    %20 = vector.shape_cast %19 : vector<1x32x32xbf16> to vector<32x32xbf16>
    %cst_18 = arith.constant dense<0.000000e+00> : vector<16x32xf32>
    %21 = tpu.matmul %18, %20, %cst_18 {dimension_numbers = #tpu.dot_dimension_numbers<[1], [0], [0], [1], [0, 0, 1, 1], [], []>} : vector<16x32xbf16>, vector<32x32xbf16>, vector<16x32xf32> -> vector<16x32xf32>
    %22 = arith.addf %16, %21 : vector<16x32xf32>
    %23 = vector.extract_strided_slice %10 {offsets = [16, 0], sizes = [16, 32], strides = [1, 1]} : vector<48x32xf32> to vector<16x32xf32>
    %24 = arith.truncf %23 : vector<16x32xf32> to vector<16x32xbf16>
    %c1 = arith.constant 1 : index
    %c0_19 = arith.constant 0 : index
    %c0_20 = arith.constant 0 : index
    %25 = vector.load %arg7[%c1, %c0_19, %c0_20] : memref<12x32x32xbf16, #tpu.memory_space<vmem>>, vector<1x32x32xbf16>
    %26 = vector.shape_cast %25 : vector<1x32x32xbf16> to vector<32x32xbf16>
    %cst_21 = arith.constant dense<0.000000e+00> : vector<16x32xf32>
    %27 = tpu.matmul %24, %26, %cst_21 {dimension_numbers = #tpu.dot_dimension_numbers<[1], [0], [0], [1], [0, 0, 1, 1], [], []>} : vector<16x32xbf16>, vector<32x32xbf16>, vector<16x32xf32> -> vector<16x32xf32>
    %28 = arith.addf %22, %27 : vector<16x32xf32>
    %29 = vector.extract_strided_slice %10 {offsets = [32, 0], sizes = [16, 32], strides = [1, 1]} : vector<48x32xf32> to vector<16x32xf32>
    %30 = arith.truncf %29 : vector<16x32xf32> to vector<16x32xbf16>
    %c2 = arith.constant 2 : index
    %c0_22 = arith.constant 0 : index
    %c0_23 = arith.constant 0 : index
    %31 = vector.load %arg7[%c2, %c0_22, %c0_23] : memref<12x32x32xbf16, #tpu.memory_space<vmem>>, vector<1x32x32xbf16>
    %32 = vector.shape_cast %31 : vector<1x32x32xbf16> to vector<32x32xbf16>
    %cst_24 = arith.constant dense<0.000000e+00> : vector<16x32xf32>
    %33 = tpu.matmul %30, %32, %cst_24 {dimension_numbers = #tpu.dot_dimension_numbers<[1], [0], [0], [1], [0, 0, 1, 1], [], []>} : vector<16x32xbf16>, vector<32x32xbf16>, vector<16x32xf32> -> vector<16x32xf32>
    %34 = arith.addf %28, %33 : vector<16x32xf32>
    %cst_25 = arith.constant 0.000000e+00 : f32
    %35 = vector.broadcast %cst_25 : f32 to vector<16x32xf32>
    %36 = arith.maximumf %34, %35 : vector<16x32xf32>
    %37 = arith.truncf %36 : vector<16x32xf32> to vector<16x32xbf16>
    %cst_26 = arith.constant dense<0.000000e+00> : vector<48x32xf32>
    %38 = tpu.matmul %1, %37, %cst_26 {dimension_numbers = #tpu.dot_dimension_numbers<[1], [0], [0], [1], [0, 0, 1, 1], [], []>} : vector<48x16xbf16>, vector<16x32xbf16>, vector<48x32xf32> -> vector<48x32xf32>
    %c1_27 = arith.constant 1 : index
    %c0_28 = arith.constant 0 : index
    %c0_29 = arith.constant 0 : index
    %39 = vector.load %arg6[%c1_27, %c0_28, %c0_29] : memref<4x32x32xbf16, #tpu.memory_space<vmem>>, vector<1x32x32xbf16>
    %40 = vector.shape_cast %39 : vector<1x32x32xbf16> to vector<32x32xbf16>
    %cst_30 = arith.constant dense<0.000000e+00> : vector<16x32xf32>
    %41 = tpu.matmul %37, %40, %cst_30 {dimension_numbers = #tpu.dot_dimension_numbers<[1], [0], [0], [1], [0, 0, 1, 1], [], []>} : vector<16x32xbf16>, vector<32x32xbf16>, vector<16x32xf32> -> vector<16x32xf32>
    %c1_31 = arith.constant 1 : index
    %c0_32 = arith.constant 0 : index
    %42 = vector.load %arg9[%c1_31, %c0_32] : memref<8x32xf32, #tpu.memory_space<vmem>>, vector<1x32xf32>
    %43 = vector.broadcast %42 : vector<1x32xf32> to vector<16x32xf32>
    %44 = arith.addf %41, %43 : vector<16x32xf32>
    %45 = vector.extract_strided_slice %38 {offsets = [0, 0], sizes = [16, 32], strides = [1, 1]} : vector<48x32xf32> to vector<16x32xf32>
    %46 = arith.truncf %45 : vector<16x32xf32> to vector<16x32xbf16>
    %c3 = arith.constant 3 : index
    %c0_33 = arith.constant 0 : index
    %c0_34 = arith.constant 0 : index
    %47 = vector.load %arg7[%c3, %c0_33, %c0_34] : memref<12x32x32xbf16, #tpu.memory_space<vmem>>, vector<1x32x32xbf16>
    %48 = vector.shape_cast %47 : vector<1x32x32xbf16> to vector<32x32xbf16>
    %cst_35 = arith.constant dense<0.000000e+00> : vector<16x32xf32>
    %49 = tpu.matmul %46, %48, %cst_35 {dimension_numbers = #tpu.dot_dimension_numbers<[1], [0], [0], [1], [0, 0, 1, 1], [], []>} : vector<16x32xbf16>, vector<32x32xbf16>, vector<16x32xf32> -> vector<16x32xf32>
    %50 = arith.addf %44, %49 : vector<16x32xf32>
    %51 = vector.extract_strided_slice %38 {offsets = [16, 0], sizes = [16, 32], strides = [1, 1]} : vector<48x32xf32> to vector<16x32xf32>
    %52 = arith.truncf %51 : vector<16x32xf32> to vector<16x32xbf16>
    %c4_36 = arith.constant 4 : index
    %c0_37 = arith.constant 0 : index
    %c0_38 = arith.constant 0 : index
    %53 = vector.load %arg7[%c4_36, %c0_37, %c0_38] : memref<12x32x32xbf16, #tpu.memory_space<vmem>>, vector<1x32x32xbf16>
    %54 = vector.shape_cast %53 : vector<1x32x32xbf16> to vector<32x32xbf16>
    %cst_39 = arith.constant dense<0.000000e+00> : vector<16x32xf32>
    %55 = tpu.matmul %52, %54, %cst_39 {dimension_numbers = #tpu.dot_dimension_numbers<[1], [0], [0], [1], [0, 0, 1, 1], [], []>} : vector<16x32xbf16>, vector<32x32xbf16>, vector<16x32xf32> -> vector<16x32xf32>
    %56 = arith.addf %50, %55 : vector<16x32xf32>
    %57 = vector.extract_strided_slice %38 {offsets = [32, 0], sizes = [16, 32], strides = [1, 1]} : vector<48x32xf32> to vector<16x32xf32>
    %58 = arith.truncf %57 : vector<16x32xf32> to vector<16x32xbf16>
    %c5 = arith.constant 5 : index
    %c0_40 = arith.constant 0 : index
    %c0_41 = arith.constant 0 : index
    %59 = vector.load %arg7[%c5, %c0_40, %c0_41] : memref<12x32x32xbf16, #tpu.memory_space<vmem>>, vector<1x32x32xbf16>
    %60 = vector.shape_cast %59 : vector<1x32x32xbf16> to vector<32x32xbf16>
    %cst_42 = arith.constant dense<0.000000e+00> : vector<16x32xf32>
    %61 = tpu.matmul %58, %60, %cst_42 {dimension_numbers = #tpu.dot_dimension_numbers<[1], [0], [0], [1], [0, 0, 1, 1], [], []>} : vector<16x32xbf16>, vector<32x32xbf16>, vector<16x32xf32> -> vector<16x32xf32>
    %62 = arith.addf %56, %61 : vector<16x32xf32>
    %cst_43 = arith.constant 0.000000e+00 : f32
    %63 = vector.broadcast %cst_43 : f32 to vector<16x32xf32>
    %64 = arith.maximumf %62, %63 : vector<16x32xf32>
    %65 = arith.truncf %64 : vector<16x32xf32> to vector<16x32xbf16>
    %cst_44 = arith.constant dense<0.000000e+00> : vector<48x32xf32>
    %66 = tpu.matmul %1, %65, %cst_44 {dimension_numbers = #tpu.dot_dimension_numbers<[1], [0], [0], [1], [0, 0, 1, 1], [], []>} : vector<48x16xbf16>, vector<16x32xbf16>, vector<48x32xf32> -> vector<48x32xf32>
    %c2_45 = arith.constant 2 : index
    %c0_46 = arith.constant 0 : index
    %c0_47 = arith.constant 0 : index
    %67 = vector.load %arg6[%c2_45, %c0_46, %c0_47] : memref<4x32x32xbf16, #tpu.memory_space<vmem>>, vector<1x32x32xbf16>
    %68 = vector.shape_cast %67 : vector<1x32x32xbf16> to vector<32x32xbf16>
    %cst_48 = arith.constant dense<0.000000e+00> : vector<16x32xf32>
    %69 = tpu.matmul %65, %68, %cst_48 {dimension_numbers = #tpu.dot_dimension_numbers<[1], [0], [0], [1], [0, 0, 1, 1], [], []>} : vector<16x32xbf16>, vector<32x32xbf16>, vector<16x32xf32> -> vector<16x32xf32>
    %c2_49 = arith.constant 2 : index
    %c0_50 = arith.constant 0 : index
    %70 = vector.load %arg9[%c2_49, %c0_50] : memref<8x32xf32, #tpu.memory_space<vmem>>, vector<1x32xf32>
    %71 = vector.broadcast %70 : vector<1x32xf32> to vector<16x32xf32>
    %72 = arith.addf %69, %71 : vector<16x32xf32>
    %73 = vector.extract_strided_slice %66 {offsets = [0, 0], sizes = [16, 32], strides = [1, 1]} : vector<48x32xf32> to vector<16x32xf32>
    %74 = arith.truncf %73 : vector<16x32xf32> to vector<16x32xbf16>
    %c6 = arith.constant 6 : index
    %c0_51 = arith.constant 0 : index
    %c0_52 = arith.constant 0 : index
    %75 = vector.load %arg7[%c6, %c0_51, %c0_52] : memref<12x32x32xbf16, #tpu.memory_space<vmem>>, vector<1x32x32xbf16>
    %76 = vector.shape_cast %75 : vector<1x32x32xbf16> to vector<32x32xbf16>
    %cst_53 = arith.constant dense<0.000000e+00> : vector<16x32xf32>
    %77 = tpu.matmul %74, %76, %cst_53 {dimension_numbers = #tpu.dot_dimension_numbers<[1], [0], [0], [1], [0, 0, 1, 1], [], []>} : vector<16x32xbf16>, vector<32x32xbf16>, vector<16x32xf32> -> vector<16x32xf32>
    %78 = arith.addf %72, %77 : vector<16x32xf32>
    %79 = vector.extract_strided_slice %66 {offsets = [16, 0], sizes = [16, 32], strides = [1, 1]} : vector<48x32xf32> to vector<16x32xf32>
    %80 = arith.truncf %79 : vector<16x32xf32> to vector<16x32xbf16>
    %c7 = arith.constant 7 : index
    %c0_54 = arith.constant 0 : index
    %c0_55 = arith.constant 0 : index
    %81 = vector.load %arg7[%c7, %c0_54, %c0_55] : memref<12x32x32xbf16, #tpu.memory_space<vmem>>, vector<1x32x32xbf16>
    %82 = vector.shape_cast %81 : vector<1x32x32xbf16> to vector<32x32xbf16>
    %cst_56 = arith.constant dense<0.000000e+00> : vector<16x32xf32>
    %83 = tpu.matmul %80, %82, %cst_56 {dimension_numbers = #tpu.dot_dimension_numbers<[1], [0], [0], [1], [0, 0, 1, 1], [], []>} : vector<16x32xbf16>, vector<32x32xbf16>, vector<16x32xf32> -> vector<16x32xf32>
    %84 = arith.addf %78, %83 : vector<16x32xf32>
    %85 = vector.extract_strided_slice %66 {offsets = [32, 0], sizes = [16, 32], strides = [1, 1]} : vector<48x32xf32> to vector<16x32xf32>
    %86 = arith.truncf %85 : vector<16x32xf32> to vector<16x32xbf16>
    %c8 = arith.constant 8 : index
    %c0_57 = arith.constant 0 : index
    %c0_58 = arith.constant 0 : index
    %87 = vector.load %arg7[%c8, %c0_57, %c0_58] : memref<12x32x32xbf16, #tpu.memory_space<vmem>>, vector<1x32x32xbf16>
    %88 = vector.shape_cast %87 : vector<1x32x32xbf16> to vector<32x32xbf16>
    %cst_59 = arith.constant dense<0.000000e+00> : vector<16x32xf32>
    %89 = tpu.matmul %86, %88, %cst_59 {dimension_numbers = #tpu.dot_dimension_numbers<[1], [0], [0], [1], [0, 0, 1, 1], [], []>} : vector<16x32xbf16>, vector<32x32xbf16>, vector<16x32xf32> -> vector<16x32xf32>
    %90 = arith.addf %84, %89 : vector<16x32xf32>
    %cst_60 = arith.constant 0.000000e+00 : f32
    %91 = vector.broadcast %cst_60 : f32 to vector<16x32xf32>
    %92 = arith.maximumf %90, %91 : vector<16x32xf32>
    %93 = arith.truncf %92 : vector<16x32xf32> to vector<16x32xbf16>
    %cst_61 = arith.constant dense<0.000000e+00> : vector<48x32xf32>
    %94 = tpu.matmul %1, %93, %cst_61 {dimension_numbers = #tpu.dot_dimension_numbers<[1], [0], [0], [1], [0, 0, 1, 1], [], []>} : vector<48x16xbf16>, vector<16x32xbf16>, vector<48x32xf32> -> vector<48x32xf32>
    %c3_62 = arith.constant 3 : index
    %c0_63 = arith.constant 0 : index
    %c0_64 = arith.constant 0 : index
    %95 = vector.load %arg6[%c3_62, %c0_63, %c0_64] : memref<4x32x32xbf16, #tpu.memory_space<vmem>>, vector<1x32x32xbf16>
    %96 = vector.shape_cast %95 : vector<1x32x32xbf16> to vector<32x32xbf16>
    %cst_65 = arith.constant dense<0.000000e+00> : vector<16x32xf32>
    %97 = tpu.matmul %93, %96, %cst_65 {dimension_numbers = #tpu.dot_dimension_numbers<[1], [0], [0], [1], [0, 0, 1, 1], [], []>} : vector<16x32xbf16>, vector<32x32xbf16>, vector<16x32xf32> -> vector<16x32xf32>
    %c3_66 = arith.constant 3 : index
    %c0_67 = arith.constant 0 : index
    %98 = vector.load %arg9[%c3_66, %c0_67] : memref<8x32xf32, #tpu.memory_space<vmem>>, vector<1x32xf32>
    %99 = vector.broadcast %98 : vector<1x32xf32> to vector<16x32xf32>
    %100 = arith.addf %97, %99 : vector<16x32xf32>
    %101 = vector.extract_strided_slice %94 {offsets = [0, 0], sizes = [16, 32], strides = [1, 1]} : vector<48x32xf32> to vector<16x32xf32>
    %102 = arith.truncf %101 : vector<16x32xf32> to vector<16x32xbf16>
    %c9 = arith.constant 9 : index
    %c0_68 = arith.constant 0 : index
    %c0_69 = arith.constant 0 : index
    %103 = vector.load %arg7[%c9, %c0_68, %c0_69] : memref<12x32x32xbf16, #tpu.memory_space<vmem>>, vector<1x32x32xbf16>
    %104 = vector.shape_cast %103 : vector<1x32x32xbf16> to vector<32x32xbf16>
    %cst_70 = arith.constant dense<0.000000e+00> : vector<16x32xf32>
    %105 = tpu.matmul %102, %104, %cst_70 {dimension_numbers = #tpu.dot_dimension_numbers<[1], [0], [0], [1], [0, 0, 1, 1], [], []>} : vector<16x32xbf16>, vector<32x32xbf16>, vector<16x32xf32> -> vector<16x32xf32>
    %106 = arith.addf %100, %105 : vector<16x32xf32>
    %107 = vector.extract_strided_slice %94 {offsets = [16, 0], sizes = [16, 32], strides = [1, 1]} : vector<48x32xf32> to vector<16x32xf32>
    %108 = arith.truncf %107 : vector<16x32xf32> to vector<16x32xbf16>
    %c10 = arith.constant 10 : index
    %c0_71 = arith.constant 0 : index
    %c0_72 = arith.constant 0 : index
    %109 = vector.load %arg7[%c10, %c0_71, %c0_72] : memref<12x32x32xbf16, #tpu.memory_space<vmem>>, vector<1x32x32xbf16>
    %110 = vector.shape_cast %109 : vector<1x32x32xbf16> to vector<32x32xbf16>
    %cst_73 = arith.constant dense<0.000000e+00> : vector<16x32xf32>
    %111 = tpu.matmul %108, %110, %cst_73 {dimension_numbers = #tpu.dot_dimension_numbers<[1], [0], [0], [1], [0, 0, 1, 1], [], []>} : vector<16x32xbf16>, vector<32x32xbf16>, vector<16x32xf32> -> vector<16x32xf32>
    %112 = arith.addf %106, %111 : vector<16x32xf32>
    %113 = vector.extract_strided_slice %94 {offsets = [32, 0], sizes = [16, 32], strides = [1, 1]} : vector<48x32xf32> to vector<16x32xf32>
    %114 = arith.truncf %113 : vector<16x32xf32> to vector<16x32xbf16>
    %c11 = arith.constant 11 : index
    %c0_74 = arith.constant 0 : index
    %c0_75 = arith.constant 0 : index
    %115 = vector.load %arg7[%c11, %c0_74, %c0_75] : memref<12x32x32xbf16, #tpu.memory_space<vmem>>, vector<1x32x32xbf16>
    %116 = vector.shape_cast %115 : vector<1x32x32xbf16> to vector<32x32xbf16>
    %cst_76 = arith.constant dense<0.000000e+00> : vector<16x32xf32>
    %117 = tpu.matmul %114, %116, %cst_76 {dimension_numbers = #tpu.dot_dimension_numbers<[1], [0], [0], [1], [0, 0, 1, 1], [], []>} : vector<16x32xbf16>, vector<32x32xbf16>, vector<16x32xf32> -> vector<16x32xf32>
    %118 = arith.addf %112, %117 : vector<16x32xf32>
    %c0_77 = arith.constant 0 : index
    %c0_78 = arith.constant 0 : index
    %c0_79 = arith.constant 0 : index
    %119 = vector.load %arg3[%c0_77, %c0_78, %c0_79] : memref<1x2x16xbf16, #tpu.memory_space<vmem>>, vector<1x2x16xbf16>
    %120 = vector.shape_cast %119 : vector<1x2x16xbf16> to vector<2x16xbf16>
    %121 = arith.truncf %118 : vector<16x32xf32> to vector<16x32xbf16>
    %cst_80 = arith.constant dense<0.000000e+00> : vector<2x32xf32>
    %122 = tpu.matmul %120, %121, %cst_80 {dimension_numbers = #tpu.dot_dimension_numbers<[1], [0], [0], [1], [0, 0, 1, 1], [], []>} : vector<2x16xbf16>, vector<16x32xbf16>, vector<2x32xf32> -> vector<2x32xf32>
    %c0_81 = arith.constant 0 : index
    %c0_82 = arith.constant 0 : index
    %c0_83 = arith.constant 0 : index
    %123 = vector.load %arg4[%c0_81, %c0_82, %c0_83] : memref<1x2x1xf32, #tpu.memory_space<vmem>>, vector<1x2x1xf32>
    %124 = vector.shape_cast %123 : vector<1x2x1xf32> to vector<2x1xf32>
    %125 = vector.broadcast %124 : vector<2x1xf32> to vector<2x32xf32>
    %126 = arith.divf %122, %125 : vector<2x32xf32>
    %127 = arith.truncf %126 : vector<2x32xf32> to vector<2x32xbf16>
    %c0_84 = arith.constant 0 : index
    %c0_85 = arith.constant 0 : index
    %128 = vector.load %arg8[%c0_84, %c0_85] : memref<32x32xbf16, #tpu.memory_space<vmem>>, vector<32x32xbf16>
    %cst_86 = arith.constant dense<0.000000e+00> : vector<2x32xf32>
    %129 = tpu.matmul %127, %128, %cst_86 {dimension_numbers = #tpu.dot_dimension_numbers<[1], [0], [0], [1], [0, 0, 1, 1], [], []>} : vector<2x32xbf16>, vector<32x32xbf16>, vector<2x32xf32> -> vector<2x32xf32>
    %c5_87 = arith.constant 5 : index
    %c0_88 = arith.constant 0 : index
    %130 = vector.load %arg9[%c5_87, %c0_88] : memref<8x32xf32, #tpu.memory_space<vmem>>, vector<1x32xf32>
    %131 = vector.broadcast %130 : vector<1x32xf32> to vector<2x32xf32>
    %132 = arith.addf %129, %131 : vector<2x32xf32>
    %cst_89 = arith.constant 0.000000e+00 : f32
    %133 = vector.broadcast %cst_89 : f32 to vector<2x32xf32>
    %134 = arith.maximumf %132, %133 : vector<2x32xf32>
    %c6_90 = arith.constant 6 : index
    %c0_91 = arith.constant 0 : index
    %135 = vector.load %arg9[%c6_90, %c0_91] : memref<8x32xf32, #tpu.memory_space<vmem>>, vector<1x32xf32>
    %c7_92 = arith.constant 7 : index
    %c0_93 = arith.constant 0 : index
    %136 = vector.load %arg9[%c7_92, %c0_93] : memref<8x32xf32, #tpu.memory_space<vmem>>, vector<1x1xf32>
    %137 = vector.broadcast %135 : vector<1x32xf32> to vector<2x32xf32>
    %138 = arith.mulf %134, %137 : vector<2x32xf32>
    %cst_94 = arith.constant dense<0.000000e+00> : vector<2xf32>
    %139 = vector.multi_reduction <add>, %138, %cst_94 [1] : vector<2x32xf32> to vector<2xf32>
    %140 = vector.shape_cast %139 : vector<2xf32> to vector<2x1xf32>
    %141 = vector.broadcast %136 : vector<1x1xf32> to vector<2x1xf32>
    %142 = arith.addf %140, %141 : vector<2x1xf32>
    %c0_95 = arith.constant 0 : index
    %c0_96 = arith.constant 0 : index
    %c0_97 = arith.constant 0 : index
    %143 = vector.load %arg10[%c0_95, %c0_96, %c0_97] : memref<1x2x1xf32, #tpu.memory_space<vmem>>, vector<1x2x1xf32>
    %144 = vector.shape_cast %143 : vector<1x2x1xf32> to vector<2x1xf32>
    %145 = vector.shape_cast %142 : vector<2x1xf32> to vector<1x2x1xf32>
    tpu.vector_store %arg10[%c0_95, %c0_96, %c0_97], %145 {strides = array<i32>} : memref<1x2x1xf32, #tpu.memory_space<vmem>>, vector<1x2x1xf32>,
    return
  }
  func.func @transform_0(%arg0: i32) -> (i32, i32, i32) {
    %c0_i32 = arith.constant 0 : i32
    %c0_i32_0 = arith.constant 0 : i32
    %c0_i32_1 = arith.constant 0 : i32
    return %arg0, %c0_i32, %c0_i32_0 : i32, i32, i32
  }
  func.func @transform_1(%arg0: i32) -> (i32, i32, i32) {
    %c0_i32 = arith.constant 0 : i32
    %c0_i32_0 = arith.constant 0 : i32
    %c0_i32_1 = arith.constant 0 : i32
    return %arg0, %c0_i32, %c0_i32_0 : i32, i32, i32
  }
  func.func @transform_2(%arg0: i32) -> (i32, i32, i32) {
    %c0_i32 = arith.constant 0 : i32
    %c0_i32_0 = arith.constant 0 : i32
    %c0_i32_1 = arith.constant 0 : i32
    return %arg0, %c0_i32, %c0_i32_0 : i32, i32, i32
  }
  func.func @transform_3(%arg0: i32) -> (i32, i32, i32) {
    %c0_i32 = arith.constant 0 : i32
    %c0_i32_0 = arith.constant 0 : i32
    %c0_i32_1 = arith.constant 0 : i32
    return %arg0, %c0_i32, %c0_i32_0 : i32, i32, i32
  }
  func.func @transform_4(%arg0: i32) -> (i32, i32) {
    %c0_i32 = arith.constant 0 : i32
    %c0_i32_0 = arith.constant 0 : i32
    %c0_i32_1 = arith.constant 0 : i32
    return %c0_i32, %c0_i32_0 : i32, i32
  }
  func.func @transform_5(%arg0: i32) -> (i32, i32, i32) {
    %c0_i32 = arith.constant 0 : i32
    %c0_i32_0 = arith.constant 0 : i32
    %c0_i32_1 = arith.constant 0 : i32
    %c0_i32_2 = arith.constant 0 : i32
    return %c0_i32, %c0_i32_0, %c0_i32_1 : i32, i32, i32
  }
  func.func @transform_6(%arg0: i32) -> (i32, i32, i32) {
    %c0_i32 = arith.constant 0 : i32
    %c0_i32_0 = arith.constant 0 : i32
    %c0_i32_1 = arith.constant 0 : i32
    %c0_i32_2 = arith.constant 0 : i32
    return %c0_i32, %c0_i32_0, %c0_i32_1 : i32, i32, i32
  }
  func.func @transform_7(%arg0: i32) -> (i32, i32) {
    %c0_i32 = arith.constant 0 : i32
    %c0_i32_0 = arith.constant 0 : i32
    %c0_i32_1 = arith.constant 0 : i32
    return %c0_i32, %c0_i32_0 : i32, i32
  }
  func.func @transform_8(%arg0: i32) -> (i32, i32) {
    %c0_i32 = arith.constant 0 : i32
    %c0_i32_0 = arith.constant 0 : i32
    %c0_i32_1 = arith.constant 0 : i32
    return %c0_i32, %c0_i32_0 : i32, i32
  }
  func.func @transform_9(%arg0: i32) -> (i32, i32, i32) {
    %c0_i32 = arith.constant 0 : i32
    %c0_i32_0 = arith.constant 0 : i32
    %c0_i32_1 = arith.constant 0 : i32
    return %arg0, %c0_i32, %c0_i32_0 : i32, i32, i32
  }
}

</mosaic_0001>

<bundles_post_ra>
// kernel: tpu_custom_call.1
= control target key start
LH: loop header
LB: loop body
LE: loop exit
PB: predicated region body
PF: predicated region fallthrough
CT: control target
= control target key end

     0   :  { %14 = vsyncpa [#allocation3], 0  ;;  %s1947_s0 = inlined_call_operand.vmem [shape: bf16[2,16,8], index: 0, kind: input, shape index: {}]   ;;  %s1948_s1 = inlined_call_operand.vmem [shape: bf16[2,48,16], index: 1, kind: input, shape index: {}]   ;;  %s1949_s2 = inlined_call_operand.vmem [shape: bf16[2,2,16], index: 2, kind: input, shape index: {}]   ;;  %s1950_s3 = inlined_call_operand.vmem [shape: f32[2,2,1], index: 3, kind: input, shape index: {}]   ;;  %s1951_s4 = inlined_call_operand.vmem [shape: bf16[8,32], index: 4, kind: input, shape index: {}]   ;;  %s1952_s5 = inlined_call_operand.vmem [shape: bf16[4,32,32], index: 5, kind: input, shape index: {}]   ;;  %s1953_s6 = inlined_call_operand.hbm [shape: bf16[12,32,32], index: 6, kind: input, shape index: {}]   ;;  %s1954_s7 = inlined_call_operand.hbm [shape: bf16[32,32], index: 7, kind: input, shape index: {}]   ;;  %s1955_s8 = inlined_call_operand.vmem [shape: f32[8,32], index: 8, kind: input, shape index: {}]   ;;  %s1956_s9 = inlined_call_operand.vmem [shape: f32[2,2,1], index: 9, kind: output, shape index: {}]  }
   0x1   :  { %15 = vsyncpa [#allocation5], 0  ;;  %s1793_s30 = smov 0  }
   0x2 LB: > { %s278_s12 = sshll.u32 %s1953_s6, 4  ;;  %s1368_s13 = sadd.s32 4294967295, %s1736_s30   ;;  %s1736_s30 = sphi %s1793_s30, %s21_s30   ;;  %s279_s12 = int_to_ptr.hbm [resolvable:$true] %s278_s12 }
   0x3   : > { %p1370_p0 = scmp.ge.s32.totalorder %s1736_s30, 1  ;;  %p261_p1 = scmp.lt.s32.totalorder %s1736_s30, 3 }
   0x4   : > { %p1634_p2 = scmp.eq.s32.totalorder %s1368_s13, 0  ;;  %s1738_s15 = smov [#allocation2]  }
   0x5   : > { %p1804_p3 = pnand %p1370_p0, %p261_p1  ;;  %s280_s16 = sshll.u32 %s1738_s15, 4  ;;  %s281_s16 = int_to_ptr.vmem [resolvable:$true] %s280_s16 }
   0x6   : > { %s292_s19 = sshll.u32 %s1954_s7, 4  ;;  %s1739_s20 = smov [#allocation4]   ;;  %s293_s19 = int_to_ptr.hbm [resolvable:$true] %s292_s19 }
   0x7   : > { %p1627_p4 = pneg %p1804_p3  ;;  %s294_s21 = sshll.u32 %s1739_s20, 4  ;;  %s295_s21 = int_to_ptr.vmem [resolvable:$true] %s294_s21 }
   0x8   : > { %s1740_s22 = smov 64   ;;  %s1741_s23 = smov 4  }
   0x9   : > { %p1628_p5 = pnand %p1634_p2, %p1627_p4  ;;  %342 = sbr.rel (%p1804_p3) target bundleno = 1818 (0x71a), region = 56 }
   0xb   : > { %1630 = dma.hbm_to_vmem [thread:$0]  (!%p1628_p5), %s279_s12, 3072, %s281_s16, [#allocation3], %s1740_s22, %s1740_s22, %s1741_s23  }
   0xc   : > { %1633 = dma.hbm_to_vmem [thread:$0]  (!%p1628_p5), %s293_s19, 256, %s295_s21, [#allocation5], %s1740_s22, %s1740_s22, %s1741_s23  }
   0xe   : > { %1727 = dma.done.wait (%p1634_p2), [#allocation3], 3072  }
   0xf   : > { %1729 = vsyncadd (%p1634_p2), [#allocation3], 4294964224 }
  0x10   : > { %1731 = dma.done.wait (%p1634_p2), [#allocation5], 256  }
  0x11   : > { %1733 = vsyncadd (%p1634_p2), [#allocation5], 4294967040  ;;  %p395_p6 = scmp.lt.s32.totalorder %s1368_s13, 1  ;;  %vm437_vm0 = vcmask 1043456   ;;  %v425_v0 = vld [vmem:[%s1951_s4] sm:$0xf] }
  0x12   : > { %v439_v1 = vsel %vm437_vm0, %v425_v0, 0  ;;  %vm433_vm1 = vcmask 64512   ;;  %v1585_v3 = vld [vmem:[%s1952_s5 + $0x8] sm:$0xff]  ;;  %v1584_v4 = vld [vmem:[%s1952_s5] sm:$0xff]  ;;  %vm523_vm2 = vcmask 261120   ;;  %vm471_vm3 = vcmask 130048  }
  0x13   : > { %s1959_s13 = smov (!%p395_p6, %s1368_s13), 1  ;;  %448 = vmatpush.bf16.msra.mxu0 %v439_v1  ;;  %533 = vmatpush.bf16.msra.mxu2 %v1585_v3  ;;  %v1652_v6 = vld [vmem:[%s1955_s8 + $0x4] ss:$0 sm:$0xff]  ;;  %v1587_v14 = vld [vmem:[#allocation2 + $0x8] sm:$0xff]  ;;  %v1589_v16 = vld [vmem:[#allocation2 + $0x18] sm:$0xff]  ;;  %vm1252_vm8 = vcmask 254976  }
  0x14   : > { %s1579_s24 = sshll.u32 %s1959_s13, 3  ;;  %s1618_s17 = smul.u32 24, %s1959_s13  ;;  %567 = vmatpush.bf16.msra.mxu3 %v1587_v14  ;;  %v1586_v15 = vld [vmem:[#allocation2] sm:$0xff]  ;;  %v1588_v17 = vld [vmem:[#allocation2 + $0x10] sm:$0xff]  ;;  %v1591_v19 = vld [vmem:[#allocation2 + $0x28] sm:$0xff]  ;;  %vm1258_vm9 = vcmask 1024  }
  0x15   : > { %s399_s27 = scalar_lea.vmem %s1947_s0, %s1579_s24  ;;  %v1590_v20 = vld [vmem:[#allocation2 + $0x20] sm:$0xff]  ;;  %v1593_v29 = vld [vmem:[%s1952_s5 + $0x18] sm:$0xff]  ;;  %v1592_v30 = vld [vmem:[%s1952_s5 + $0x10] sm:$0xff]  ;;  %s407_s28 = scalar_lea.vmem %s1949_s2, %s1959_s13 }
  0x16   : > { %v1583_v2 = vld [vmem:[%s399_s27] sm:$0xff]  ;;  %s404_s20 = scalar_lea.vmem %s1948_s1, %s1618_s17  ;;  %v1595_v51 = vld [vmem:[#allocation2 + $0x38] sm:$0xff]  ;;  %v1594_v52 = vld [vmem:[#allocation2 + $0x30] sm:$0xff] }
  0x17   : > { %1386 = vmatmul.msk.bf16.vlgmr.msra.gmra.mxu0 %vm433_vm1, %v1583_v2  ;;  %534 = vmatpush.bf16.msra.mxu2 %v1584_v4  ;;  %v1842_v11 = vld [vmem:[%s404_s20] sm:$0xff]  ;;  %v1847_v12 = vld [vmem:[%s404_s20 + $0x8] sm:$0xff]  ;;  %v1851_v13 = vld [vmem:[%s404_s20 + $0x10] sm:$0xff]  ;;  %s1380_s20 = sshll.u32 %s1959_s13, 1 }
  0x18   : > { %568 = vmatpush.bf16.msra.mxu3 %v1586_v15  ;;  %604 = vmatpush.bf16.msrb.mxu0 %v1589_v16  ;;  %v1653_v35 = vld [vmem:[%s1955_s8] ss:$0 sm:$0xff]  ;;  %v1599_v53 = vld [vmem:[#allocation2 + $0x58] sm:$0xff]  ;;  %v1597_v54 = vld [vmem:[#allocation2 + $0x48] sm:$0xff]  ;;  %s411_s23 = scalar_lea.vmem %s1950_s3, %s1380_s20  ;;  %s415_s18 = scalar_lea.vmem %s1956_s9, %s1380_s20 }
  0x19   : > { %v1596_v55 = vld [vmem:[#allocation2 + $0x40] sm:$0xff]  ;;  %v1598_v57 = vld [vmem:[#allocation2 + $0x50] sm:$0xff]  ;;  %v1601_v2 = vld [vmem:[%s1952_s5 + $0x28] sm:$0xff] }
  0x1a   : > { %v1600_v4 = vld [vmem:[%s1952_s5 + $0x20] sm:$0xff] }
  0x1b   : > { %641 = vmatpush.bf16.msrb.mxu2 %v1591_v19 }
  0x1c   : > { %605 = vmatpush.bf16.msrb.mxu0 %v1588_v17 }
  0x1f   : > { %642 = vmatpush.bf16.msrb.mxu2 %v1590_v20 }
  0x20   : > { %706 = vmatpush.bf16.msra.mxu0 %v1593_v29  ;;  %v1602_v29 = vld [vmem:[#allocation2 + $0x60] sm:$0xff] }
  0x24   : > { %707 = vmatpush.bf16.msra.mxu0 %v1592_v30  ;;  %v1604_v30 = vld [vmem:[#allocation2 + $0x70] sm:$0xff] }
  0x94   : > { %v450_v5 = vpop.f32.mrf.mxu0 }
  0x95   : > { %v451_v8 = vadd.f32 %v1652_v6, %v450_v5 }
  0x9c   : > { %v452_v7 = vpop.f32.mrf.mxu0 }
  0x9d   : > { %v453_v9 = vadd.f32 %v1652_v6, %v452_v7 }
  0x9f   : > { %v455_v10 = vpack.c.bf16 %v453_v9, %v451_v8  ;;  %v1654_v8 = vld [vmem:[%s1955_s8 + $0x1] ss:$0 sm:$0xff] }
  0xa1   : > { %488 = vmatpush.bf16.msra.mxu1 %v455_v10  ;;  %1410 = vmatmul.msk.bf16.vlgmr.msra.gmra.mxu2 %vm523_vm2, %v455_v10 }
  0xa2   : > { %741 = vmatpush.bf16.msra.mxu2 %v1595_v51 }
  0xa4   : > { %1399 = vmatmul.msk.bf16.vlgmr.msra.gmra.mxu1 %vm471_vm3, %v1842_v11 }
  0xa5   : > { %815 = vmatpush.bf16.msrb.mxu1 %v1599_v53 }
  0xa6   : > { %742 = vmatpush.bf16.msra.mxu2 %v1594_v52 }
  0xa9   : > { %816 = vmatpush.bf16.msrb.mxu1 %v1598_v57 }
  0xb4   : > { %1400 = vmatmul.msk.bf16.gmra.mxu1 %vm471_vm3, %v1847_v12 }
  0xc4   : > { %1401 = vmatmul.msk.bf16.gmra.mxu1 %vm471_vm3, %v1851_v13 }
 0x121   : > { %v490_v18 = vpop.f32.mrf.mxu1 }
 0x124   : > { %v536_v31 = vpop.f32.mrf.mxu2 }
 0x125   : > { %v537_v37 = vadd.f32 %v1653_v35, %v536_v31 }
 0x129   : > { %v492_v21 = vpop.f32.mrf.mxu1 }
 0x12a   : > { %v541_v22 = vpack.c.bf16 %v492_v21, %v490_v18 }
 0x12c   : > { %1419 = vmatmul.msk.bf16.vlgmr.msra.gmra.mxu3 %vm523_vm2, %v541_v22  ;;  %v538_v32 = vpop.f32.mrf.mxu2 }
 0x12d   : > { %v539_v39 = vadd.f32 %v1653_v35, %v538_v32  ;;  %v1607_v32 = vld [vmem:[#allocation2 + $0x88] sm:$0xff] }
 0x131   : > { %v495_v23 = vpop.f32.mrf.mxu1 }
 0x139   : > { %v497_v24 = vpop.f32.mrf.mxu1 }
 0x13a   : > { %v577_v25 = vpack.c.bf16 %v497_v24, %v495_v23 }
 0x13c   : > { %1428 = vmatmul.msk.bf16.vlgmr.msrb.gmra.mxu0 %vm523_vm2, %v577_v25 }
 0x13d   : > { %778 = vmatpush.bf16.msrb.mxu0 %v1597_v54 }
 0x141   : > { %v500_v26 = vpop.f32.mrf.mxu1  ;;  %779 = vmatpush.bf16.msrb.mxu0 %v1596_v55 }
 0x149   : > { %v502_v27 = vpop.f32.mrf.mxu1 }
 0x14a   : > { %v614_v28 = vpack.c.bf16 %v502_v27, %v500_v26  ;;  %v1605_v27 = vld [vmem:[#allocation2 + $0x78] sm:$0xff] }
 0x14c   : > { %1437 = vmatmul.msk.bf16.vlgmr.msrb.gmra.mxu2 %vm523_vm2, %v614_v28  ;;  %v1603_v28 = vld [vmem:[#allocation2 + $0x68] sm:$0xff] }
 0x14d   : > { %915 = vmatpush.bf16.msra.mxu1 %v1603_v28 }
 0x151   : > { %916 = vmatpush.bf16.msra.mxu1 %v1602_v29 }
 0x1af   : > { %v570_v33 = vpop.f32.mrf.mxu3 }
 0x1b0   : > { %v575_v40 = vadd.f32 %v570_v33, %v537_v37  ;;  %v1606_v33 = vld [vmem:[#allocation2 + $0x80] sm:$0xff] }
 0x1b7   : > { %v572_v38 = vpop.f32.mrf.mxu3 }
 0x1b8   : > { %v576_v42 = vadd.f32 %v572_v38, %v539_v39 }
 0x1b9   : > { %v607_v34 = vpop.f32.mrf.mxu0 }
 0x1ba   : > { %v612_v43 = vadd.f32 %v607_v34, %v575_v40 }
 0x1c1   : > { %v609_v41 = vpop.f32.mrf.mxu0 }
 0x1c2   : > { %v613_v44 = vadd.f32 %v609_v41, %v576_v42  ;;  %v1609_v42 = vld [vmem:[%s1952_s5 + $0x38] sm:$0xff] }
 0x1cf   : > { %v644_v36 = vpop.f32.mrf.mxu2 }
 0x1d0   : > { %v649_v45 = vadd.f32 %v644_v36, %v612_v43  ;;  %v1608_v43 = vld [vmem:[%s1952_s5 + $0x30] sm:$0xff] }
 0x1d2   : > { %v651_v48 = vmax.f32 %v649_v45, 0.0 }
 0x1d7   : > { %v646_v46 = vpop.f32.mrf.mxu2 }
 0x1d8   : > { %v650_v47 = vadd.f32 %v646_v46, %v613_v44 }
 0x1da   : > { %v652_v49 = vmax.f32 %v650_v47, 0.0 }
 0x1dc   : > { %v653_v50 = vpack.c.bf16 %v652_v49, %v651_v48  ;;  %v1655_v48 = vld [vmem:[%s1955_s8 + $0x2] ss:$0 sm:$0xff] }
 0x1de   : > { %661 = vmatpush.bf16.msrb.mxu3 %v653_v50  ;;  %1453 = vmatmul.msk.bf16.vlgmr.msra.gmra.mxu0 %vm523_vm2, %v653_v50 }
 0x1df   : > { %880 = vmatpush.bf16.msra.mxu0 %v1601_v2  ;;  %v1610_v2 = vld [vmem:[#allocation2 + $0x90] sm:$0xff] }
 0x1e1   : > { %1438 = vmatmul.msk.bf16.vlgmr.msrb.gmra.mxu3 %vm471_vm3, %v1842_v11 }
 0x1e2   : > { %952 = vmatpush.bf16.msra.mxu3 %v1605_v27 }
 0x1e3   : > { %881 = vmatpush.bf16.msra.mxu0 %v1600_v4 }
 0x1e6   : > { %953 = vmatpush.bf16.msra.mxu3 %v1604_v30 }
 0x1ea   : > { %1054 = vmatpush.bf16.msrb.mxu3 %v1609_v42 }
 0x1ee   : > { %1055 = vmatpush.bf16.msrb.mxu3 %v1608_v43 }
 0x1f1   : > { %1439 = vmatmul.msk.bf16.gmra.mxu3 %vm471_vm3, %v1847_v12 }
 0x201   : > { %1440 = vmatmul.msk.bf16.gmra.mxu3 %vm471_vm3, %v1851_v13 }
 0x25b   : > { %v709_v3 = vpop.f32.mrf.mxu0 }
 0x25c   : > { %v710_v10 = vadd.f32 %v1654_v8, %v709_v3  ;;  %v1612_v3 = vld [vmem:[#allocation2 + $0xa0] sm:$0xff] }
 0x263   : > { %v711_v5 = vpop.f32.mrf.mxu0 }
 0x264   : > { %v663_v56 = vpop.f32.mrf.mxu3  ;;  %v712_v15 = vadd.f32 %v1654_v8, %v711_v5  ;;  %v1615_v5 = vld [vmem:[#allocation2 + $0xb8] sm:$0xff] }
 0x26c   : > { %v665_v58 = vpop.f32.mrf.mxu3 }
 0x26d   : > { %v714_v59 = vpack.c.bf16 %v665_v58, %v663_v56 }
 0x26f   : > { %1462 = vmatmul.msk.bf16.vlgmr.msra.gmra.mxu2 %vm523_vm2, %v714_v59 }
 0x274   : > { %v668_v60 = vpop.f32.mrf.mxu3 }
 0x27c   : > { %v670_v61 = vpop.f32.mrf.mxu3 }
 0x27d   : > { %v751_v62 = vpack.c.bf16 %v670_v61, %v668_v60 }
 0x27f   : > { %1471 = vmatmul.msk.bf16.vlgmr.msrb.gmra.mxu0 %vm523_vm2, %v751_v62 }
 0x280   : > { %989 = vmatpush.bf16.msrb.mxu0 %v1607_v32 }
 0x284   : > { %v673_v63 = vpop.f32.mrf.mxu3  ;;  %990 = vmatpush.bf16.msrb.mxu0 %v1606_v33 }
 0x28c   : > { %v675_v0 = vpop.f32.mrf.mxu3 }
 0x28d   : > { %v788_v1 = vpack.c.bf16 %v675_v0, %v673_v63  ;;  %v1611_v0 = vld [vmem:[#allocation2 + $0x98] sm:$0xff] }
 0x28f   : > { %1480 = vmatmul.msk.bf16.vlgmr.msrb.gmra.mxu1 %vm523_vm2, %v788_v1  ;;  %v1613_v1 = vld [vmem:[#allocation2 + $0xa8] sm:$0xff] }
 0x2f2   : > { %v744_v6 = vpop.f32.mrf.mxu2 }
 0x2f3   : > { %v749_v16 = vadd.f32 %v744_v6, %v710_v10 }
 0x2fa   : > { %v746_v14 = vpop.f32.mrf.mxu2 }
 0x2fb   : > { %v750_v18 = vadd.f32 %v746_v14, %v712_v15  ;;  %v1742_v15 = vmov 0  }
 0x2fc   : > { %v781_v7 = vpop.f32.mrf.mxu0  ;;  %1651 = vset.pattern.permute.xlu0 %v1742_v15 }
 0x2fd   : > { %v786_v19 = vadd.f32 %v781_v7, %v749_v16  ;;  %v1191_v16 = vld [vmem:[%s411_s23] sm:$0x3] }
 0x2fe   : > { %1194 = vperm.xlu0 %1651, %v1191_v16  }
 0x304   : > { %v783_v17 = vpop.f32.mrf.mxu0 }
 0x305   : > { %v787_v20 = vadd.f32 %v783_v17, %v750_v18 }
 0x30c   : > { %v818_v9 = vpop.f32.mrf.mxu1 }
 0x30d   : > { %v823_v21 = vadd.f32 %v818_v9, %v786_v19 }
 0x30f   : > { %v825_v24 = vmax.f32 %v823_v21, 0.0  ;;  %v1656_v21 = vld [vmem:[%s1955_s8 + $0x3] ss:$0 sm:$0xff] }
 0x314   : > { %v820_v22 = vpop.f32.mrf.mxu1 }
 0x315   : > { %v824_v23 = vadd.f32 %v820_v22, %v787_v20 }
 0x317   : > { %v826_v25 = vmax.f32 %v824_v23, 0.0 }
 0x319   : > { %v827_v26 = vpack.c.bf16 %v826_v25, %v825_v24 }
 0x31b   : > { %835 = vmatpush.bf16.msrb.mxu2 %v827_v26  ;;  %1496 = vmatmul.msk.bf16.vlgmr.msra.gmra.mxu0 %vm523_vm2, %v827_v26 }
 0x31c   : > { %1089 = vmatpush.bf16.msra.mxu0 %v1611_v0 }
 0x31e   : > { %1481 = vmatmul.msk.bf16.vlgmr.msrb.gmra.mxu2 %vm471_vm3, %v1842_v11 }
 0x31f   : > { %1126 = vmatpush.bf16.msra.mxu2 %v1613_v1 }
 0x320   : > { %1090 = vmatpush.bf16.msra.mxu0 %v1610_v2 }
 0x323   : > { %1127 = vmatpush.bf16.msra.mxu2 %v1612_v3 }
 0x32e   : > { %1482 = vmatmul.msk.bf16.gmra.mxu2 %vm471_vm3, %v1847_v12 }
 0x33e   : > { %1483 = vmatmul.msk.bf16.gmra.mxu2 %vm471_vm3, %v1851_v13 }
 0x398   : > { %v883_v44 = vpop.f32.mrf.mxu0 }
 0x399   : > { %v884_v50 = vadd.f32 %v1655_v48, %v883_v44 }
 0x3a0   : > { %v885_v45 = vpop.f32.mrf.mxu0 }
 0x3a1   : > { %v837_v31 = vpop.f32.mrf.mxu2  ;;  %v886_v52 = vadd.f32 %v1655_v48, %v885_v45 }
 0x3a9   : > { %v839_v34 = vpop.f32.mrf.mxu2 }
 0x3aa   : > { %v888_v35 = vpack.c.bf16 %v839_v34, %v837_v31 }
 0x3ac   : > { %1505 = vmatmul.msk.bf16.vlgmr.msra.gmra.mxu1 %vm523_vm2, %v888_v35  ;;  %v1173_v35 = vld [vmem:[%s407_s28] sm:$0x1] }
 0x3b1   : > { %v842_v36 = vpop.f32.mrf.mxu2 }
 0x3b9   : > { %v844_v37 = vpop.f32.mrf.mxu2 }
 0x3ba   : > { %v925_v38 = vpack.c.bf16 %v844_v37, %v842_v36  ;;  %v1617_v36 = vld [vmem:[#allocation4 + $0x8] sm:$0xff]  ;;  %v1616_v37 = vld [vmem:[#allocation4] sm:$0xff] }
 0x3bb   : > { %1240 = vmatpush.bf16.msrb.mxu2 %v1617_v36 }
 0x3bc   : > { %1514 = vmatmul.msk.bf16.vlgmr.msra.gmra.mxu3 %vm523_vm2, %v925_v38  ;;  %v1195_v38 = vpop.permute.xlu0 %1194 }
 0x3bd   : > { %1163 = vmatpush.bf16.msra.mxu3 %v1615_v5  ;;  %1660 = vrcp.f32 %v1195_v38  ;;  %vm1202_vm4 = vweird.f32 %v1195_v38  ;;  %v1208_v43 = vand.u32 2147483648, %v1195_v38  ;;  %v1206_v45 = vand.u32 2147483647, %v1195_v38 }
 0x3bf   : > { %1241 = vmatpush.bf16.msrb.mxu2 %v1616_v37  ;;  %vm1207_vm7 = vcmp.eq.f32.partialorder %v1206_v45, 8.507059e+37 }
 0x3c1   : > { %v847_v39 = vpop.f32.mrf.mxu2 }
 0x3c9   : > { %v849_v40 = vpop.f32.mrf.mxu2 }
 0x3ca   : > { %v962_v41 = vpack.c.bf16 %v849_v40, %v847_v39  ;;  %v1661_v39 = vpop.eup %1660 }
 0x3cb   : > { %v1198_v40 = vmul.f32 %v1661_v39, %v1195_v38  ;;  %vm1203_vm5 = vweird.f32 %v1661_v39 }
 0x3cc   : > { %1523 = vmatmul.msk.bf16.vlgmr.msrb.gmra.mxu0 %vm523_vm2, %v962_v41  ;;  %vm1204_vm6 = vmor %vm1202_vm4, %vm1203_vm5 }
 0x3cd   : > { %v1199_v41 = vsub.f32 1.0, %v1198_v40 }
 0x3cf   : > { %v1200_v42 = vmul.f32 %v1661_v39, %v1199_v41 }
 0x3d1   : > { %v1201_v44 = vadd.f32 %v1661_v39, %v1200_v42 }
 0x429   : > { %v918_v46 = vpop.f32.mrf.mxu1 }
 0x42a   : > { %v923_v53 = vadd.f32 %v918_v46, %v884_v50  ;;  %v1209_v46 = vor.u32 1.1754944e-38, %v1208_v43 }
 0x431   : > { %v920_v51 = vpop.f32.mrf.mxu1 }
 0x432   : > { %v924_v55 = vadd.f32 %v920_v51, %v886_v52 }
 0x43f   : > { %v955_v47 = vpop.f32.mrf.mxu3 }
 0x440   : > { %v960_v56 = vadd.f32 %v955_v47, %v923_v53  ;;  %v1205_v47 = vsel %vm1204_vm6, %v1661_v39, %v1201_v44  ;;  %v1657_v53 = vld [vmem:[%s1955_s8 + $0x5] ss:$0 sm:$0xff] }
 0x447   : > { %v957_v54 = vpop.f32.mrf.mxu3 }
 0x448   : > { %v961_v57 = vadd.f32 %v957_v54, %v924_v55 }
 0x449   : > { %v992_v49 = vpop.f32.mrf.mxu0 }
 0x44a   : > { %v997_v58 = vadd.f32 %v992_v49, %v960_v56  ;;  %v1210_v49 = vsel %vm1207_vm7, %v1209_v46, %v1205_v47  ;;  %v1658_v56 = vld [vmem:[%s1955_s8 + $0x6] ss:$0 sm:$0xff] }
 0x44c   : > { %v999_v61 = vmax.f32 %v997_v58, 0.0 }
 0x451   : > { %v994_v59 = vpop.f32.mrf.mxu0 }
 0x452   : > { %v998_v60 = vadd.f32 %v994_v59, %v961_v57 }
 0x454   : > { %v1000_v62 = vmax.f32 %v998_v60, 0.0 }
 0x456   : > { %v1001_v63 = vpack.c.bf16 %v1000_v62, %v999_v61  ;;  %v1659_v61 = vld [vmem:[%s1955_s8 + $0x7] ss:$0 sm:$0xff] }
 0x458   : > { %1009 = vmatpush.bf16.msrb.mxu1 %v1001_v63  ;;  %1539 = vmatmul.msk.bf16.vlgmr.msrb.gmra.mxu3 %vm523_vm2, %v1001_v63 }
 0x45b   : > { %1524 = vmatmul.msk.bf16.vlgmr.msrb.gmra.mxu1 %vm471_vm3, %v1842_v11  ;;  %v1614_v11 = vld [vmem:[#allocation2 + $0xb0] sm:$0xff] }
 0x45c   : > { %1164 = vmatpush.bf16.msra.mxu3 %v1614_v11 }
 0x46b   : > { %1525 = vmatmul.msk.bf16.gmra.mxu1 %vm471_vm3, %v1847_v12 }
 0x47b   : > { %1526 = vmatmul.msk.bf16.gmra.mxu1 %vm471_vm3, %v1851_v13 }
 0x4d8   : > { %v1011_v4 = vpop.f32.mrf.mxu1 }
 0x4db   : > { %v1057_v17 = vpop.f32.mrf.mxu3 }
 0x4dc   : > { %v1058_v24 = vadd.f32 %v1656_v21, %v1057_v17 }
 0x4e0   : > { %v1013_v6 = vpop.f32.mrf.mxu1 }
 0x4e1   : > { %v1062_v12 = vpack.c.bf16 %v1013_v6, %v1011_v4 }
 0x4e3   : > { %1548 = vmatmul.msk.bf16.vlgmr.msra.gmra.mxu0 %vm523_vm2, %v1062_v12  ;;  %v1059_v18 = vpop.f32.mrf.mxu3 }
 0x4e4   : > { %v1060_v25 = vadd.f32 %v1656_v21, %v1059_v18 }
 0x4e8   : > { %v1016_v13 = vpop.f32.mrf.mxu1 }
 0x4f0   : > { %v1018_v7 = vpop.f32.mrf.mxu1 }
 0x4f1   : > { %v1099_v8 = vpack.c.bf16 %v1018_v7, %v1016_v13 }
 0x4f3   : > { %1557 = vmatmul.msk.bf16.vlgmr.msra.gmra.mxu2 %vm523_vm2, %v1099_v8 }
 0x4f8   : > { %v1021_v9 = vpop.f32.mrf.mxu1 }
 0x500   : > { %v1023_v10 = vpop.f32.mrf.mxu1 }
 0x501   : > { %v1136_v14 = vpack.c.bf16 %v1023_v10, %v1021_v9 }
 0x503   : > { %1566 = vmatmul.msk.bf16.vlgmr.msra.gmra.mxu3 %vm523_vm2, %v1136_v14 }
 0x560   : > { %v1092_v19 = vpop.f32.mrf.mxu0 }
 0x561   : > { %v1097_v27 = vadd.f32 %v1092_v19, %v1058_v24 }
 0x568   : > { %v1094_v23 = vpop.f32.mrf.mxu0 }
 0x569   : > { %v1098_v28 = vadd.f32 %v1094_v23, %v1060_v25 }
 0x576   : > { %v1129_v20 = vpop.f32.mrf.mxu2 }
 0x577   : > { %v1134_v29 = vadd.f32 %v1129_v20, %v1097_v27 }
 0x57e   : > { %v1131_v26 = vpop.f32.mrf.mxu2 }
 0x57f   : > { %v1135_v30 = vadd.f32 %v1131_v26, %v1098_v28 }
 0x586   : > { %v1166_v22 = vpop.f32.mrf.mxu3 }
 0x587   : > { %v1171_v32 = vadd.f32 %v1166_v22, %v1134_v29 }
 0x58e   : > { %v1168_v31 = vpop.f32.mrf.mxu3 }
 0x58f   : > { %v1172_v33 = vadd.f32 %v1168_v31, %v1135_v30 }
 0x591   : > { %v1174_v34 = vpack.c.bf16 %v1172_v33, %v1171_v32 }
 0x593   : > { %1185 = vmatpush.bf16.msrb.mxu0 %v1174_v34 }
 0x596   : > { %1567 = vmatmul.msk.bf16.vlgmr.msrb.gmra.mxu0 %vm471_vm3, %v1173_v35 }
 0x613   : > { %v1187_v48 = vpop.f32.mrf.mxu0 }
 0x614   : > { %v1211_v50 = vmul.f32 %v1210_v49, %v1187_v48 }
 0x616   : > { %v1212_v51 = vpack.c.bf16 %v1211_v50, %v1211_v50 }
 0x618   : > { %1576 = vmatmul.msk.bf16.vlgmr.msrb.gmra.mxu2 %vm523_vm2, %v1212_v51 }
 0x61b   : > { %v1189_v52 = vpop.f32.mrf.mxu0 }
 0x69b   : > { %v1243_v54 = vpop.f32.mrf.mxu2 }
 0x69c   : > { %v1244_v55 = vadd.f32 %v1657_v53, %v1243_v54 }
 0x69e   : > { %v1247_v57 = vmax.f32 %v1244_v55, 0.0 }
 0x6a0   : > { %v1251_v58 = vmul.f32 %v1658_v56, %v1247_v57 }
 0x6a2   : > { %v1253_v59 = vsel %vm1252_vm8, %v1251_v58, 0.0 }
 0x6a3   : > { %v1245_v60 = vpop.f32.mrf.mxu2  ;;  %1254 = vadd.xlane.f32.xlu0 %v1253_v59 }
 0x716   : > { %v1255_v62 = vpop.xlane.xlu0 %1254 }
 0x717   : > { %v1257_v63 = vadd.f32 %v1659_v61, %v1255_v62 }
 0x719   : > { %1259 = vst.msk [vmem:[%s415_s18] sm:$0x3] %vm1258_vm9, %v1257_v63 }
 0x71a PF: > { %s21_s30 = sadd.s32 1, %s1736_s30  }
 0x71b   : > { %p18_p7 = scmp.ge.s32.totalorder %s21_s30, 4  }
 0x71d   :  { %20 = sbr.rel (!%p18_p7) target bundleno = 2 (0x2), region = 118 }
 0x722   :  { %1279 = vsyncpa [#allocation3], 1 }
 0x723   :  { %1281 = vsyncpa [#allocation3 + $0x1], 1 }
 0x724   :  { %1282 = vsyncpa [#allocation5], 1 }

</bundles_post_ra>
